<compile_context>
chip_gen: v6e
topology: v6e:2x2x1
jax: 0.10.0
libtpu: 0.0.40
codegen_flags: <defaults>
</compile_context>

<pallas_src>
import math

import jax
import jax.numpy as jnp
from jax import lax
from jax.experimental import pallas as pl
from jax.experimental.pallas import tpu as pltpu


def _round_up(a, m):
    return ((a + m - 1) // m) * m


# ---------------------------------------------------------------------------
# Kernel bodies
# ---------------------------------------------------------------------------
def _rope_kernel_shared(x_ref, cos_ref, sin_ref, o_ref):
    """Positions shared across rows: cos/sin are a single pre-expanded row.

    cos_ref = (c0,c0,c1,c1,...), sin_ref = (-s0,+s0,-s1,+s1,...), each (1, w) f32,
    broadcast per-vreg in the multiplies (never materialized at (tile_b, w)).
    """
    x = x_ref[...]                                        # native dtype (bf16 stays bf16)
    w = x.shape[-1]
    lane = lax.broadcasted_iota(jnp.int32, x.shape, 1)
    is_even = (lane % 2) == 0
    # Pair swap via two lane rotations + parity select; wrapped lanes of each
    # roll are only produced where the other roll is selected -> edge-exact.
    x_swap = jnp.where(is_even,
                       pltpu.roll(x, shift=w - 1, axis=1),   # x[j+1] at even j
                       pltpu.roll(x, shift=1, axis=1))       # x[j-1] at odd j
    out = x.astype(jnp.float32) * cos_ref[...] + x_swap.astype(jnp.float32) * sin_ref[...]
    o_ref[...] = out.astype(o_ref.dtype)


def _rope_kernel_packed(x_ref, cs_ref, o_ref):
    """Per-row positions: cs_ref is a packed (c0,s0,c1,s1,...) f32 block.

    The masked full-width coefficient forms are expanded in-kernel (rolls on the
    XLU + parity selects), so only 4 B of coefficients per element cross HBM.
    """
    x = x_ref[...]
    cs = cs_ref[...]                                      # f32 (tile_b, w)
    w = x.shape[-1]
    lane = lax.broadcasted_iota(jnp.int32, x.shape, 1)
    is_even = (lane % 2) == 0
    # cos_full = (c0,c0,c1,c1,...) ; sin_sgn = (-s0,+s0,-s1,+s1,...)
    cos_full = jnp.where(is_even, cs, pltpu.roll(cs, shift=1, axis=1))
    sin_sgn = jnp.where(is_even, -pltpu.roll(cs, shift=w - 1, axis=1), cs)
    x_swap = jnp.where(is_even,
                       pltpu.roll(x, shift=w - 1, axis=1),
                       pltpu.roll(x, shift=1, axis=1))
    out = x.astype(jnp.float32) * cos_full + x_swap.astype(jnp.float32) * sin_sgn
    o_ref[...] = out.astype(o_ref.dtype)


# ---------------------------------------------------------------------------
# Tiling helpers (divisor-based: pads become no-ops on aligned shapes)
# ---------------------------------------------------------------------------
_SD_TILE_CAP = 4096     # lane-tile cap (elements), multiple of 128
_ROW_TILE_CAP = 1024    # row-tile cap


def _choose_lane_tiling(total_sd):
    """Return (sd_pad, tile_sd); sd_pad == total_sd unless a rare pad is forced."""
    if total_sd % 128 == 0:
        upper = min(_SD_TILE_CAP, total_sd)
        for cand in range(upper, 127, -128):
            if total_sd % cand == 0:
                return total_sd, cand
    if total_sd <= 4 * _SD_TILE_CAP:
        # Unaligned but small: one full-width block (full-dim blocks are exempt
        # from the (8,128) divisibility rule) -> still no pad copy.
        return total_sd, total_sd
    # TODO(synk): huge lane extent not a multiple of 128 forces one pad copy.
    sd_pad = _round_up(total_sd, 128)
    upper = min(_SD_TILE_CAP, sd_pad)
    for cand in range(upper, 127, -128):
        if sd_pad % cand == 0:
            return sd_pad, cand
    return sd_pad, 128


def _choose_row_tiling(B, rows_cap):
    """Return (B_pad, tile_b); B_pad == B unless a rare pad is forced."""
    rows_cap = max(8, int(rows_cap))
    if B % 8 == 0:
        upper = min(rows_cap, B)
        upper -= upper % 8
        for cand in range(max(upper, 8), 7, -8):
            if B % cand == 0:
                return B, cand
    if B <= max(rows_cap, 8):
        return B, B                      # full-dim rows: no pad, exempt from /8 rule
    # TODO(synk): large row count not divisible by 8 forces one pad copy.
    B_pad = _round_up(B, 8)
    upper = min(rows_cap, B_pad)
    upper -= upper % 8
    for cand in range(max(upper, 8), 7, -8):
        if B_pad % cand == 0:
            return B_pad, cand
    return B_pad, 8


# ---------------------------------------------------------------------------
# Forward wrapper
# ---------------------------------------------------------------------------
@jax.jit
def rope_forward(x, token_positions, cos_cache, sin_cache):
    """RoPE forward matching the PyTorch module.

    x:                   (..., seq, d_k)
    token_positions:     int array broadcastable against x[..., :, 0]
    cos_cache/sin_cache: (max_seq_len, d_k // 2) float32
    """
    orig_shape = x.shape
    orig_dtype = x.dtype
    d_k = orig_shape[-1]
    assert d_k % 2 == 0, "d_k must be even for RoPE"
    seq = orig_shape[-2]
    batch_dims = orig_shape[:-2]
    B = math.prod(batch_dims) if batch_dims else 1
    total_sd = seq * d_k

    tp = jnp.asarray(token_positions)
    # TODO(synk): jnp.take clamps out-of-range token_positions; PyTorch would raise an index error.
    shared = (tp.ndim <= 1) or all(int(d) == 1 for d in tp.shape[:-1])

    if shared:
        # Positions only vary along seq: a single coefficient row is reused for
        # every row tile via the index_map (never broadcast in HBM).
        pos = jnp.broadcast_to(tp.reshape(tp.shape[-1:] if tp.ndim else (1,)), (seq,))
        cos_g = jnp.take(cos_cache, pos, axis=0).astype(jnp.float32)   # (seq, d_k//2)
        sin_g = jnp.take(sin_cache, pos, axis=0).astype(jnp.float32)
        cos_t = jnp.repeat(cos_g, 2, axis=-1).reshape(1, total_sd)             # c0,c0,c1,c1,...
        sin_t = jnp.stack([-sin_g, sin_g], axis=-1).reshape(1, total_sd)       # -s0,+s0,-s1,+s1,...
    else:
        # Positions vary across leading dims: one packed f32 (cos|sin) table row
        # per flattened batch row -> 4 B of coefficient HBM per x element.
        pos = jnp.broadcast_to(tp, orig_shape[:-1]).reshape(B, seq)
        cos_g = jnp.take(cos_cache, pos, axis=0).astype(jnp.float32)   # (B, seq, d_k//2)
        sin_g = jnp.take(sin_cache, pos, axis=0).astype(jnp.float32)
        cs_t = jnp.stack([cos_g, sin_g], axis=-1).reshape(B, total_sd)         # c0,s0,c1,s1,...

    # ---- VMEM budget: pipeline blocks + in-kernel temporaries ---------------
    try:
        info = pltpu.get_tpu_info()
        vmem_cap = int(getattr(info, "vmem_capacity_bytes", 64 * 1024 * 1024))
    except Exception:  # conservative default (covers v7x's 64 MiB per-TC VMEM)
        vmem_cap = 64 * 1024 * 1024
    vmem_limit = max(32 << 20, min((vmem_cap * 3) // 4, 96 << 20))
    block_budget = vmem_limit // 2        # leave half for compiler scratch/headroom

    itemsize = jnp.dtype(orig_dtype).itemsize
    coeff_bpe = 0 if shared else 4        # per-element coefficient bytes in the pipeline
    pipe_bpe = 2 * itemsize + 2 * itemsize + 2 * coeff_bpe          # double-buffered x in/out/coeff
    temp_bpe = 3 * itemsize + 3 * 4 + (0 if shared else 4 * 4)      # rolls, f32 upcasts/result, coeff expand
    bpe = pipe_bpe + temp_bpe

    sd_pad, tile_sd = _choose_lane_tiling(total_sd)
    assert tile_sd % 2 == 0, "tile must not split a rotation pair"
    rows_cap = min(_ROW_TILE_CAP, max(8, block_budget // (tile_sd * bpe)))
    B_pad, tile_b = _choose_row_tiling(B, rows_cap)

    # v7x has 2 TensorCores: make sure small inputs still produce >= 2 parallel
    # grid steps (also restores DMA/compute overlap for a one-block tensor).
    if (sd_pad // tile_sd) * (B_pad // tile_b) == 1:
        if tile_sd % 256 == 0:
            tile_sd //= 2
        elif tile_b % 16 == 0:
            tile_b //= 2

    assert sd_pad % tile_sd == 0 and B_pad % tile_b == 0
    grid = (sd_pad // tile_sd, B_pad // tile_b)   # rows innermost -> shared coeff block reuse

    def _pad2(a, rows, cols):
        pr, pc = rows - a.shape[0], cols - a.shape[1]
        return jnp.pad(a, ((0, pr), (0, pc))) if (pr or pc) else a   # no-op on aligned shapes

    x2 = _pad2(x.reshape(B, total_sd), B_pad, sd_pad)

    x_spec = pl.BlockSpec((tile_b, tile_sd), lambda i, b: (b, i))
    if shared:
        cos_t = _pad2(cos_t, 1, sd_pad)
        sin_t = _pad2(sin_t, 1, sd_pad)
        coef_spec = pl.BlockSpec((1, tile_sd), lambda i, b: (0, i))
        kernel = _rope_kernel_shared
        in_specs = [x_spec, coef_spec, coef_spec]
        operands = (x2, cos_t, sin_t)
    else:
        cs_t = _pad2(cs_t, B_pad, sd_pad)
        cs_spec = pl.BlockSpec((tile_b, tile_sd), lambda i, b: (b, i))
        kernel = _rope_kernel_packed
        in_specs = [x_spec, cs_spec]
        operands = (x2, cs_t)

    out = pl.pallas_call(
        kernel,
        out_shape=jax.ShapeDtypeStruct((B_pad, sd_pad), orig_dtype),
        grid_spec=pltpu.PrefetchScalarGridSpec(
            num_scalar_prefetch=0,
            grid=grid,
            in_specs=in_specs,
            out_specs=x_spec,
        ),
        compiler_params=pltpu.CompilerParams(
            dimension_semantics=("parallel", "parallel"),
            vmem_limit_bytes=int(vmem_limit),
        ),
    )(*operands)

    if B_pad != B or sd_pad != total_sd:
        out = out[:B, :total_sd]
    return out.reshape(orig_shape)


# ---------------------------------------------------------------------------
# Cache construction + pure-JAX reference (mirror of the PyTorch module)
# ---------------------------------------------------------------------------
def make_rope_caches(theta, d_k, max_seq_len, dtype=jnp.float32):
    """Deterministic construction of cos/sin caches (mirrors module __init__)."""
    assert d_k % 2 == 0, "d_k must be even for RoPE"
    freqs = 1.0 / theta ** (jnp.arange(0, d_k, 2, dtype=dtype) / d_k)   # (d_k//2,)
    positions = jnp.arange(max_seq_len, dtype=dtype)                    # (max_seq_len,)
    angles = jnp.outer(positions, freqs)                                # (max_seq_len, d_k//2)
    return jnp.cos(angles), jnp.sin(angles)


def _rope_reference(x, token_positions, cos_cache, sin_cache):
    """Pure-JAX reference mirroring the PyTorch forward exactly."""
    cos_vals = cos_cache[token_positions]
    sin_vals = sin_cache[token_positions]
    x_pairs = x.reshape(x.shape[:-1] + (x.shape[-1] // 2, 2))
    r0 = x_pairs[..., 0] * cos_vals - x_pairs[..., 1] * sin_vals
    r1 = x_pairs[..., 0] * sin_vals + x_pairs[..., 1] * cos_vals
    return jnp.stack([r0, r1], axis=-1).reshape(x.shape)


if __name__ == "__main__":
    theta = 10000.0
    d_k = 32
    max_seq_len = 16
    batch, heads, seq = 2, 3, 8

    cos_cache, sin_cache = make_rope_caches(theta, d_k, max_seq_len)

    key = jax.random.PRNGKey(0)
    k1, k2, k3 = jax.random.split(key, 3)

    # Case 1: positions shared across batch/head dims (common, coefficient-reuse path).
    x1 = jax.random.normal(k1, (batch, heads, seq, d_k), dtype=jnp.float32)
    pos1 = jnp.arange(seq, dtype=jnp.int32)
    out1 = jax.block_until_ready(rope_forward(x1, pos1, cos_cache, sin_cache))
    ref1 = _rope_reference(x1, pos1, cos_cache, sin_cache)
    assert out1.shape == x1.shape and out1.dtype == x1.dtype
    assert jnp.allclose(out1, ref1, atol=1e-5, rtol=1e-5), "mismatch (shared positions)"

    # Case 2: per-row token positions (batch-dependent offsets, packed-table path).
    x2 = jax.random.normal(k2, (batch, seq, d_k), dtype=jnp.float32)
    pos2 = jnp.arange(seq, dtype=jnp.int32)[None, :] + jnp.array([[0], [5]], dtype=jnp.int32)
    out2 = jax.block_until_ready(rope_forward(x2, pos2, cos_cache, sin_cache))
    ref2 = _rope_reference(x2, pos2, cos_cache, sin_cache)
    assert out2.shape == x2.shape and out2.dtype == x2.dtype
    assert jnp.allclose(out2, ref2, atol=1e-5, rtol=1e-5), "mismatch (per-row positions)"

    # Case 3: bf16 activations (native-dtype rolls, f32 math, bf16 output).
    x3 = jax.random.normal(k3, (batch, heads, seq, d_k), dtype=jnp.float32).astype(jnp.bfloat16)
    out3 = jax.block_until_ready(rope_forward(x3, pos1, cos_cache, sin_cache))
    ref3 = _rope_reference(x3.astype(jnp.float32), pos1, cos_cache, sin_cache)
    assert out3.shape == x3.shape and out3.dtype == x3.dtype
    assert jnp.allclose(out3.astype(jnp.float32), ref3, atol=2e-2, rtol=2e-2), "mismatch (bf16)"

    print("KERNEL_OK")
</pallas_src>

<mosaic_0001>
module attributes {stable_mosaic.version = 11 : i64} {
  func.func @_rope_kernel_shared(%arg0: i32, %arg1: i32, %arg2: memref<6x128xf32, #tpu.memory_space<vmem>>, %arg3: memref<1x128xf32, #tpu.memory_space<vmem>>, %arg4: memref<1x128xf32, #tpu.memory_space<vmem>>, %arg5: memref<6x128xf32, #tpu.memory_space<vmem>>) attributes {dimension_semantics = [#tpu.dimension_semantics<parallel>, #tpu.dimension_semantics<parallel>], iteration_bounds = array<i64: 2, 1>, scalar_prefetch = 0 : i64, scratch_operands = 0 : i64, tpu.core_type = #tpu.core_type<tc>, window_params = [{transform_indices = @transform_0, window_bounds = array<i64: 6, 128>}, {transform_indices = @transform_1, window_bounds = array<i64: 1, 128>}, {transform_indices = @transform_2, window_bounds = array<i64: 1, 128>}, {transform_indices = @transform_3, window_bounds = array<i64: 6, 128>}]} {
    %c0 = arith.constant 0 : index
    %c0_0 = arith.constant 0 : index
    %0 = vector.load %arg2[%c0, %c0_0] : memref<6x128xf32, #tpu.memory_space<vmem>>, vector<6x128xf32>
    %1 = tpu.iota {dimensions = array<i32: 1>} : vector<6x128xi32>
    %c2_i32 = arith.constant 2 : i32
    %c0_i32 = arith.constant 0 : i32
    %2 = arith.cmpi eq, %c2_i32, %c0_i32 : i32
    %c1_i32 = arith.constant 1 : i32
    %3 = arith.select %2, %c1_i32, %c2_i32 : i32
    %4 = vector.broadcast %3 : i32 to vector<6x128xi32>
    %5 = arith.remsi %1, %4 : vector<6x128xi32>
    %c0_i32_1 = arith.constant 0 : i32
    %6 = vector.broadcast %c0_i32_1 : i32 to vector<6x128xi32>
    %7 = arith.cmpi ne, %5, %6 : vector<6x128xi32>
    %c0_i32_2 = arith.constant 0 : i32
    %8 = vector.broadcast %c0_i32_2 : i32 to vector<6x128xi32>
    %9 = arith.cmpi slt, %5, %8 : vector<6x128xi32>
    %c0_i32_3 = arith.constant 0 : i32
    %10 = arith.cmpi slt, %3, %c0_i32_3 : i32
    %11 = vector.broadcast %10 : i1 to vector<6x128xi1>
    %12 = vector.broadcast %11 : vector<6x128xi1> to vector<6x128xi1>
    %13 = arith.xori %9, %12 : vector<6x128xi1>
    %14 = arith.andi %13, %7 : vector<6x128xi1>
    %15 = vector.broadcast %3 : i32 to vector<6x128xi32>
    %16 = arith.addi %5, %15 : vector<6x128xi32>
    %17 = arith.select %14, %16, %5 : vector<6x128xi1>, vector<6x128xi32>
    %c0_i32_4 = arith.constant 0 : i32
    %18 = vector.broadcast %c0_i32_4 : i32 to vector<6x128xi32>
    %19 = arith.cmpi eq, %17, %18 : vector<6x128xi32>
    %c127_i32 = arith.constant 127 : i32
    %20 = tpu.dynamic_rotate %0 by %c127_i32 dim 1 : vector<6x128xf32>, i32 -> vector<6x128xf32>
    %c1_i32_5 = arith.constant 1 : i32
    %21 = tpu.dynamic_rotate %0 by %c1_i32_5 dim 1 : vector<6x128xf32>, i32 -> vector<6x128xf32>
    %22 = arith.select %19, %20, %21 : vector<6x128xi1>, vector<6x128xf32>
    %c0_6 = arith.constant 0 : index
    %c0_7 = arith.constant 0 : index
    %23 = vector.load %arg3[%c0_6, %c0_7] : memref<1x128xf32, #tpu.memory_space<vmem>>, vector<1x128xf32>
    %24 = vector.broadcast %23 : vector<1x128xf32> to vector<6x128xf32>
    %25 = arith.mulf %0, %24 : vector<6x128xf32>
    %c0_8 = arith.constant 0 : index
    %c0_9 = arith.constant 0 : index
    %26 = vector.load %arg4[%c0_8, %c0_9] : memref<1x128xf32, #tpu.memory_space<vmem>>, vector<1x128xf32>
    %27 = vector.broadcast %26 : vector<1x128xf32> to vector<6x128xf32>
    %28 = arith.mulf %22, %27 : vector<6x128xf32>
    %29 = arith.addf %25, %28 : vector<6x128xf32>
    %c0_10 = arith.constant 0 : index
    %c0_11 = arith.constant 0 : index
    %30 = vector.load %arg5[%c0_10, %c0_11] : memref<6x128xf32, #tpu.memory_space<vmem>>, vector<6x128xf32>
    tpu.vector_store %arg5[%c0_10, %c0_11], %29 {strides = array<i32>} : memref<6x128xf32, #tpu.memory_space<vmem>>, vector<6x128xf32>,
    return
  }
  func.func @transform_0(%arg0: i32, %arg1: i32) -> (i32, i32) {
    %c0_i32 = arith.constant 0 : i32
    return %arg1, %arg0 : i32, i32
  }
  func.func @transform_1(%arg0: i32, %arg1: i32) -> (i32, i32) {
    %c0_i32 = arith.constant 0 : i32
    %c0_i32_0 = arith.constant 0 : i32
    return %c0_i32, %arg0 : i32, i32
  }
  func.func @transform_2(%arg0: i32, %arg1: i32) -> (i32, i32) {
    %c0_i32 = arith.constant 0 : i32
    %c0_i32_0 = arith.constant 0 : i32
    return %c0_i32, %arg0 : i32, i32
  }
  func.func @transform_3(%arg0: i32, %arg1: i32) -> (i32, i32) {
    %c0_i32 = arith.constant 0 : i32
    return %arg1, %arg0 : i32, i32
  }
}

</mosaic_0001>

<bundles_post_ra>
// kernel: rope_forward.1
= control target key start
LH: loop header
LB: loop body
LE: loop exit
PB: predicated region body
PF: predicated region fallthrough
CT: control target
= control target key end

     0   :  { %s453_s12 = smov 0   ;;  %s455_s13 = smov 0   ;;  %s492_s0 = inlined_call_operand.vmem [shape: f32[6,256], index: 0, kind: input, shape index: {}]   ;;  %s493_s1 = inlined_call_operand.vmem [shape: f32[1,256], index: 1, kind: input, shape index: {}]   ;;  %s494_s2 = inlined_call_operand.vmem [shape: f32[1,256], index: 2, kind: input, shape index: {}]   ;;  %s495_s3 = inlined_call_operand.vmem [shape: f32[6,256], index: 3, kind: output, shape index: {}]  }
   0x1   :  { %s457_s14 = smov 0  }
   0x2 LB: > { %s25_s15 = sadd.s32 1, %s425_s13  ;;  %p374_p0 = scmp.ge.s32.totalorder %s429_s14, 1  ;;  %s429_s14 = sphi %s457_s14, %s13_s14   ;;  %s425_s13 = sphi %s455_s13, %s497_s13   ;;  %s421_s12 = sphi %s453_s12, %s496_s12  }
   0x3   : > { %p27_p1 = scmp.ge.s32.totalorder %s25_s15, 2  ;;  %p172_p2 = scmp.lt.s32.totalorder %s429_s14, 3 }
   0x5   : > { %s499_s15 = smov (%p27_p1, %s25_s15), 0  ;;  %p173_p3 = pnand %p374_p0, %p172_p2 }
   0x6   : > { %p210_p4 = scmp.lt.s32.totalorder (!%p173_p3), %s421_s12, 1  ;;  %s431_s23 = smov (!%p173_p3), 127  }
   0x7   : > { %176 = sbr.rel (%p173_p3) target bundleno = 141 (0x8d), region = 32  ;;  %s432_s24 = smov (!%p173_p3), 1  }
   0xc   : > { %s501_s12 = smov (!%p210_p4, %s421_s12), 1  ;;  %v231_v3 = vlaneseq }
   0xd   : > { %s375_s16 = sshll.u32 %s501_s12, 3  ;;  %s218_s19 = scalar_lea.vmem %s493_s1, %s501_s12 }
   0xe   : > { %s215_s22 = scalar_lea.vmem %s492_s0, %s375_s16  ;;  %v377_v0 = vld [vmem:[%s218_s19] ss:$0 sm:$0xff]  ;;  %v232_v4 = vand.u32 127, %v231_v3  ;;  %s221_s27 = scalar_lea.vmem %s494_s2, %s501_s12 }
   0xf   : > { %v230_v1 = vld [vmem:[%s215_s22] sm:$0x3f]  ;;  %s229_s30 = scalar_lea.vmem %s495_s3, %s375_s16 }
  0x10   : > { %246 = vrot.lane.b32.xlu0 %v230_v1, %s431_s23  ;;  %v258_v2 = vmul.f32 %v377_v0, %v230_v1  ;;  %v237_v5 = vand.u32 1, %v232_v4  ;;  %v378_v7 = vld [vmem:[%s221_s27] ss:$0 sm:$0xff] }
  0x12   : > { %vm245_vm0 = vcmp.eq.s32.totalorder %v237_v5, 0 }
  0x14   : > { %248 = vrot.lane.b32.xlu0 %v230_v1, %s432_s24 }
  0x82   : > { %v247_v6 = vpop.permute.xlu0 %246 }
  0x86   : > { %v249_v8 = vpop.permute.xlu0 %248 }
  0x87   : > { %v250_v9 = vsel %vm245_vm0, %v247_v6, %v249_v8 }
  0x88   : > { %v266_v10 = vmul.f32 %v378_v7, %v250_v9 }
  0x8a   : > { %v267_v11 = vadd.f32 %v266_v10, %v258_v2 }
  0x8c   : > { %268 = vst [vmem:[%s229_s30] sm:$0x3f] %v267_v11 }
  0x8d PF: > { %s13_s14 = sadd.s32 1, %s429_s14   ;;  %s496_s12 = smov %s425_s13 }
  0x8e   : > { %p10_p5 = scmp.ge.s32.totalorder %s13_s14, 4   ;;  %s497_s13 = smov %s499_s15 }
  0x90   :  { %12 = sbr.rel (!%p10_p5) target bundleno = 2 (0x2), region = 68 }

</bundles_post_ra>
